<compile_context>
chip_gen: v5e
topology: v5e:2x2
jax: 0.10.0
libtpu: 0.0.40
codegen_flags: <defaults>
</compile_context>

<pallas_src>
import jax
import jax.numpy as jnp
from jax.experimental import pallas as pl
from jax.experimental.pallas import tpu as pltpu

HIDDEN = 128
SUBLANE = 8


def _round_up(n, m):
    return ((n + m - 1) // m) * m


def dqn_kernel(x_ref, w1_ref, b1_ref, w2_ref, b2_ref, out_ref):
    # Cast x f32 -> bf16 in-kernel (VPU op, hides under MXU/DMA slack).
    x = x_ref[...].astype(w1_ref.dtype)
    # Layer 1: (Bt, D_in) @ (D_in, 128) on the MXU, f32 accumulation.
    h = jnp.dot(x, w1_ref[...], preferred_element_type=jnp.float32)
    h = jnp.maximum(h + b1_ref[...], 0.0)                  # bias + ReLU in f32 (VPU)
    # Layer 2: (Bt, 128) @ (128, D_out), f32 accumulation.
    y = jnp.dot(h.astype(w2_ref.dtype), w2_ref[...],
                preferred_element_type=jnp.float32)
    out_ref[...] = (y + b2_ref[...]).astype(out_ref.dtype)


def prepare_params(w1, b1, w2, b2, matmul_dtype=jnp.bfloat16):
    """Call once (at init / after each optimizer step): cast weights to the MXU dtype
    and shape biases as (1, N). Keeps per-forward-call XLA op count minimal."""
    return (jnp.asarray(w1, matmul_dtype),
            jnp.asarray(b1, jnp.float32).reshape(1, -1),
            jnp.asarray(w2, matmul_dtype),
            jnp.asarray(b2, jnp.float32).reshape(1, -1))


def dqn_forward(x, w1, b1, w2, b2, *, block_b=1024, single_block_rows=512,
                matmul_dtype=jnp.bfloat16):
    """x: (B, D_in) f32.  w1: (D_in, 128), w2: (128, D_out) (ideally pre-prepared bf16).
    Returns (B, D_out) f32 Q-values."""
    B, D_in = x.shape
    D_in_w, H = w1.shape
    H2, D_out = w2.shape
    assert D_in_w == D_in and H == HIDDEN and H2 == HIDDEN

    # No-ops if prepare_params() was already applied.
    w1 = jnp.asarray(w1, matmul_dtype)
    w2 = jnp.asarray(w2, matmul_dtype)
    b1 = jnp.asarray(b1, jnp.float32).reshape(1, HIDDEN)
    b2 = jnp.asarray(b2, jnp.float32).reshape(1, D_out)

    out_shape = jax.ShapeDtypeStruct((B, D_out), jnp.float32)

    B8 = _round_up(B, SUBLANE)
    if B8 <= max(single_block_rows, SUBLANE):
        # Single block: no grid -> no software-pipeline scaffolding / double-buffering.
        return pl.pallas_call(
            dqn_kernel,
            out_shape=out_shape,
            in_specs=[pl.BlockSpec(memory_space=pltpu.MemorySpace.VMEM)] * 5,
            out_specs=pl.BlockSpec(memory_space=pltpu.MemorySpace.VMEM),
        )(x, w1, b1, w2, b2)

    # Tiled path: batch-only grid; weights/biases use constant index_maps so they stay
    # resident in VMEM across steps. Ensure >= 2 grid steps so v7x's 2 TCs both work.
    block_b = _round_up(max(block_b, SUBLANE), SUBLANE)          # defensive 8-alignment
    Bt = min(block_b, _round_up(pl.cdiv(B8, 2), SUBLANE))
    grid = (pl.cdiv(B, Bt),)
    return pl.pallas_call(
        dqn_kernel,
        out_shape=out_shape,
        grid=grid,
        in_specs=[
            pl.BlockSpec((Bt, D_in), lambda i: (i, 0)),          # last dim == full D_in
            pl.BlockSpec((D_in, HIDDEN), lambda i: (0, 0)),
            pl.BlockSpec((1, HIDDEN), lambda i: (0, 0)),
            pl.BlockSpec((HIDDEN, D_out), lambda i: (0, 0)),
            pl.BlockSpec((1, D_out), lambda i: (0, 0)),
        ],
        # Unpadded D_out: masked stores, but ~16x fewer writeback bytes at D_out=8.
        out_specs=pl.BlockSpec((Bt, D_out), lambda i: (i, 0)),
        compiler_params=pltpu.CompilerParams(
            dimension_semantics=("parallel",),
        ),
    )(x, w1, b1, w2, b2)


def init_params(key, input_dim, output_dim):
    """Deterministic init mimicking nn.Linear default (uniform +/- 1/sqrt(fan_in)).
    Weights stored pre-transposed as (in, out) so the kernel computes x @ W + b."""
    k1, k2, k3, k4 = jax.random.split(key, 4)
    bound1 = 1.0 / jnp.sqrt(input_dim)
    bound2 = 1.0 / jnp.sqrt(HIDDEN)
    w1 = jax.random.uniform(k1, (input_dim, HIDDEN), jnp.float32, -bound1, bound1)
    b1 = jax.random.uniform(k2, (1, HIDDEN), jnp.float32, -bound1, bound1)
    w2 = jax.random.uniform(k3, (HIDDEN, output_dim), jnp.float32, -bound2, bound2)
    b2 = jax.random.uniform(k4, (1, output_dim), jnp.float32, -bound2, bound2)
    return w1, b1, w2, b2


def ref_forward(x, w1, b1, w2, b2):
    """Pure-JAX reference with matching numerics (bf16 matmul operands, f32 accum)."""
    h = jnp.dot(x.astype(jnp.bfloat16), w1.astype(jnp.bfloat16),
                preferred_element_type=jnp.float32)
    h = jnp.maximum(h + b1.astype(jnp.float32), 0.0)
    y = jnp.dot(h.astype(jnp.bfloat16), w2.astype(jnp.bfloat16),
                preferred_element_type=jnp.float32)
    return y + b2.astype(jnp.float32)


if __name__ == "__main__":
    # Small state-vector DQN: batch=8, input_dim=32 (state features), output_dim=8 (actions)
    B, INPUT_DIM, OUTPUT_DIM = 8, 32, 8

    key = jax.random.PRNGKey(0)
    kx, kx2, kp = jax.random.split(key, 3)
    x = jax.random.normal(kx, (B, INPUT_DIM), jnp.float32)
    w1, b1, w2, b2 = init_params(kp, INPUT_DIM, OUTPUT_DIM)
    pw1, pb1, pw2, pb2 = prepare_params(w1, b1, w2, b2)   # one-time cast/reshape

    # Single-block (no-grid) path.
    out = jax.block_until_ready(dqn_forward(x, pw1, pb1, pw2, pb2))
    assert out.shape == (B, OUTPUT_DIM)
    ref = ref_forward(x, w1, b1, w2, b2)
    assert jnp.allclose(out, ref, atol=1e-2, rtol=1e-2), "mismatch vs bf16/f32 reference"
    ref_f32 = jnp.maximum(x @ w1 + b1, 0.0) @ w2 + b2
    assert jnp.allclose(out, ref_f32, atol=5e-2, rtol=5e-2), "mismatch vs f32 reference"

    # Batch-tiled path with a ragged last block (B2 not a multiple of the tile size):
    # exercises the >=2 "parallel" grid steps and OOB-row discard.
    B2 = 1500
    x2 = jax.random.normal(kx2, (B2, INPUT_DIM), jnp.float32)
    out2 = jax.block_until_ready(dqn_forward(x2, pw1, pb1, pw2, pb2))
    assert out2.shape == (B2, OUTPUT_DIM)
    ref2 = ref_forward(x2, w1, b1, w2, b2)
    assert jnp.allclose(out2, ref2, atol=1e-2, rtol=1e-2), "mismatch vs reference (tiled path)"

    # TODO(synk): replay buffer / epsilon-greedy / optimizer step of the DQN agent are
    # host-side training logic, not part of the forward kernel.
    print("KERNEL_OK")
</pallas_src>

<mosaic_0001>
module attributes {stable_mosaic.version = 11 : i64} {
  func.func @dqn_kernel(%arg0: memref<8x32xf32, #tpu.memory_space<vmem>>, %arg1: memref<32x128xbf16, #tpu.memory_space<vmem>>, %arg2: memref<1x128xf32, #tpu.memory_space<vmem>>, %arg3: memref<128x8xbf16, #tpu.memory_space<vmem>>, %arg4: memref<1x8xf32, #tpu.memory_space<vmem>>, %arg5: memref<8x8xf32, #tpu.memory_space<vmem>>) attributes {dimension_semantics = [], scalar_prefetch = 0 : i64, scratch_operands = 0 : i64, tpu.core_type = #tpu.core_type<tc>} {
    %c0 = arith.constant 0 : index
    %c0_0 = arith.constant 0 : index
    %0 = vector.load %arg0[%c0, %c0_0] : memref<8x32xf32, #tpu.memory_space<vmem>>, vector<8x32xf32>
    %1 = arith.truncf %0 : vector<8x32xf32> to vector<8x32xbf16>
    %c0_1 = arith.constant 0 : index
    %c0_2 = arith.constant 0 : index
    %2 = vector.load %arg1[%c0_1, %c0_2] : memref<32x128xbf16, #tpu.memory_space<vmem>>, vector<32x128xbf16>
    %cst = arith.constant dense<0.000000e+00> : vector<8x128xf32>
    %3 = tpu.matmul %1, %2, %cst {dimension_numbers = #tpu.dot_dimension_numbers<[1], [0], [0], [1], [0, 0, 1, 1], [], []>} : vector<8x32xbf16>, vector<32x128xbf16>, vector<8x128xf32> -> vector<8x128xf32>
    %c0_3 = arith.constant 0 : index
    %c0_4 = arith.constant 0 : index
    %4 = vector.load %arg2[%c0_3, %c0_4] : memref<1x128xf32, #tpu.memory_space<vmem>>, vector<1x128xf32>
    %5 = vector.broadcast %4 : vector<1x128xf32> to vector<8x128xf32>
    %6 = arith.addf %3, %5 : vector<8x128xf32>
    %cst_5 = arith.constant 0.000000e+00 : f32
    %7 = vector.broadcast %cst_5 : f32 to vector<8x128xf32>
    %8 = arith.maximumf %6, %7 : vector<8x128xf32>
    %9 = arith.truncf %8 : vector<8x128xf32> to vector<8x128xbf16>
    %c0_6 = arith.constant 0 : index
    %c0_7 = arith.constant 0 : index
    %10 = vector.load %arg3[%c0_6, %c0_7] : memref<128x8xbf16, #tpu.memory_space<vmem>>, vector<128x8xbf16>
    %cst_8 = arith.constant dense<0.000000e+00> : vector<8x8xf32>
    %11 = tpu.matmul %9, %10, %cst_8 {dimension_numbers = #tpu.dot_dimension_numbers<[1], [0], [0], [1], [0, 0, 1, 1], [], []>} : vector<8x128xbf16>, vector<128x8xbf16>, vector<8x8xf32> -> vector<8x8xf32>
    %c0_9 = arith.constant 0 : index
    %c0_10 = arith.constant 0 : index
    %12 = vector.load %arg4[%c0_9, %c0_10] : memref<1x8xf32, #tpu.memory_space<vmem>>, vector<1x8xf32>
    %13 = vector.broadcast %12 : vector<1x8xf32> to vector<8x8xf32>
    %14 = arith.addf %11, %13 : vector<8x8xf32>
    %c0_11 = arith.constant 0 : index
    %c0_12 = arith.constant 0 : index
    %15 = vector.load %arg5[%c0_11, %c0_12] : memref<8x8xf32, #tpu.memory_space<vmem>>, vector<8x8xf32>
    tpu.vector_store %arg5[%c0_11, %c0_12], %14 {strides = array<i32>} : memref<8x8xf32, #tpu.memory_space<vmem>>, vector<8x8xf32>,
    return
  }
}

</mosaic_0001>

<bundles_post_ra>
// kernel: tpu_custom_call.1
= control target key start
LH: loop header
LB: loop body
LE: loop exit
PB: predicated region body
PF: predicated region fallthrough
CT: control target
= control target key end

     0   :  { %s315_s0 = inlined_call_operand.vmem [shape: f32[8,32], index: 0, kind: input, shape index: {}]   ;;  %s316_s1 = inlined_call_operand.vmem [shape: bf16[32,128], index: 1, kind: input, shape index: {}]   ;;  %s317_s2 = inlined_call_operand.vmem [shape: f32[1,128], index: 2, kind: input, shape index: {}]   ;;  %s318_s3 = inlined_call_operand.vmem [shape: bf16[128,8], index: 3, kind: input, shape index: {}]   ;;  %s319_s4 = inlined_call_operand.vmem [shape: f32[1,8], index: 4, kind: input, shape index: {}]   ;;  %s320_s5 = inlined_call_operand.hbm [shape: f32[8,8], index: 5, kind: output, shape index: {}]  }
   0x1   :  { %v204_v0 = vld [vmem:[%s316_s1 + $0x8] sm:$0xff]  ;;  %v212_v1 = vld [vmem:[%s318_s3 + $0x38] sm:$0xff]  ;;  %v203_v2 = vld [vmem:[%s316_s1] sm:$0xff] }
   0x2   :  { %54 = vmatpush.bf16.msra.mxu0 %v204_v0  ;;  %v22_v3 = vld [vmem:[%s315_s0] sm:$0xff]  ;;  %131 = vmatpush.bf16.msra.mxu1 %v212_v1  ;;  %v211_v4 = vld [vmem:[%s318_s3 + $0x30] sm:$0xff] }
   0x3   :  { %10 = vsyncpa [#allocation3], 0  ;;  %v23_v5 = vpack.c.bf16 %v22_v3, %v22_v3  ;;  %vm44_vm0 = vcmask 261120   ;;  %v210_v6 = vld [vmem:[%s318_s3 + $0x28] sm:$0xff]  ;;  %v209_v7 = vld [vmem:[%s318_s3 + $0x20] sm:$0xff]  ;;  %s242_s17 = smov [#allocation2]  }
   0x4   :  { %v208_v8 = vld [vmem:[%s318_s3 + $0x18] sm:$0xff]  ;;  %v207_v9 = vld [vmem:[%s318_s3 + $0x10] sm:$0xff]  ;;  %v206_v10 = vld [vmem:[%s318_s3 + $0x8] sm:$0xff]  ;;  %s151_s18 = sshll.u32 %s242_s17, 4  ;;  %vm144_vm1 = vcmask 64512   ;;  %s152_s18 = int_to_ptr.vmem [resolvable:$true] %s151_s18 }
   0x5   :  { %v205_v11 = vld [vmem:[%s318_s3] sm:$0xff]  ;;  %s153_s3 = sshll.u32 %s320_s5, 4  ;;  %s154_s3 = int_to_ptr.hbm [resolvable:$true] %s153_s3 }
   0x6   :  { %55 = vmatpush.bf16.msra.mxu0 %v203_v2  ;;  %132 = vmatpush.bf16.msra.mxu1 %v211_v4  ;;  %v214_v12 = vld [vmem:[%s317_s2] ss:$0 sm:$0xff] }
   0x7   :  { %v215_v18 = vld [vmem:[%s319_s4] ss:$0 sm:$0xff] }
   0x9   :  { %170 = vmatmul.msk.bf16.vlgmr.msra.gmra.mxu0 %vm44_vm0, %v23_v5 }
   0xa   :  { %133 = vmatpush.bf16.msra.mxu1 %v210_v6 }
   0xe   :  { %134 = vmatpush.bf16.msra.mxu1 %v209_v7 }
  0x12   :  { %135 = vmatpush.bf16.msra.mxu1 %v208_v8 }
  0x16   :  { %136 = vmatpush.bf16.msra.mxu1 %v207_v9 }
  0x1a   :  { %137 = vmatpush.bf16.msra.mxu1 %v206_v10 }
  0x1e   :  { %138 = vmatpush.bf16.msra.mxu1 %v205_v11 }
  0x86   :  { %v57_v13 = vpop.f32.mrf.mxu0 }
  0x87   :  { %v58_v14 = vadd.f32 %v214_v12, %v57_v13 }
  0x89   :  { %v61_v15 = vmax.f32 %v58_v14, 0.0 }
  0x8b   :  { %v62_v16 = vpack.c.bf16 %v61_v15, %v61_v15 }
  0x8d   :  { %139 = vmatmul.bf16.vlgmr.msra.gmra.mxu1 %v62_v16 }
  0x8e   :  { %v59_v17 = vpop.f32.mrf.mxu0 }
 0x10a   :  { %v140_v19 = vpop.f32.mrf.mxu1 }
 0x10b   :  { %v141_v20 = vadd.f32 %v215_v18, %v140_v19 }
 0x10d   :  { %145 = vst.msk [vmem:[#allocation2] sm:$0xff] %vm144_vm1, %v141_v20 }
 0x10e   :  { %156 = dma.vmem_to_hbm [thread:$0]  %s152_s18, 128, %s154_s3, [#allocation3]  }
 0x112   :  { %v142_v21 = vpop.f32.mrf.mxu1 }
 0x113   :  { %240 = dma.done.wait [#allocation3], 128  }
 0x114   :  { %241 = vsyncadd [#allocation3], 4294967168 }
 0x115   :  { %161 = vsyncpa [#allocation3], 1 }

</bundles_post_ra>
